<compile_context>
chip_gen: v7x
topology: tpu7x:2x2x1
jax: 0.10.0
libtpu: 0.0.40
codegen_flags: <defaults>
</compile_context>

<pallas_src>
import jax
import jax.numpy as jnp
from jax.experimental import pallas as pl
from jax.experimental.pallas import tpu as pltpu

EPS = 1e-3  # CharbonnierLoss eps


def _gauss_band_matrix(n: int) -> jnp.ndarray:
    """Banded matrix implementing 1-D 5-tap Gaussian conv with replicate pad."""
    k = jnp.array([0.05, 0.25, 0.4, 0.25, 0.05], dtype=jnp.float32)
    idx = jnp.arange(n)
    a = jnp.zeros((n, n), dtype=jnp.float32)
    for t in range(-2, 3):
        src = jnp.clip(idx + t, 0, n - 1)
        a = a + k[t + 2] * jax.nn.one_hot(src, n, dtype=jnp.float32)
    return a  # out[i] = sum_j a[i, j] * img[j]


def _edge_loss_kernel(x_ref, y_ref, mh_ref, mw_ref, out_ref):
    # x_ref, y_ref : (GRP, H, G*W)  lane-packed image slabs
    # mh_ref       : (H, H)         folded row operator
    # mw_ref       : (G*W, G*W)     block-diag folded column operator
    # out_ref      : (1, 8, 128)    per-grid-step partial sum (stored at [0,0,0])
    grp = x_ref.shape[0]
    eps2 = jnp.float32(EPS * EPS)
    mh = mh_ref[...]
    mw = mw_ref[...]

    acc = jnp.float32(0.0)
    for s in range(grp):  # static unroll over slabs in this block
        d = x_ref[s] - y_ref[s]                                   # (H, GW)
        t = jnp.dot(d, mw, preferred_element_type=jnp.float32)    # (H, GW)
        f2 = jnp.dot(mh, t, preferred_element_type=jnp.float32)   # (H, GW)
        r = d - f2                                                # lap(x) - lap(y)
        acc = acc + jnp.sum(jnp.sqrt(r * r + eps2))

    # Place the scalar partial sum at [0, 0] of a lane/sublane-aligned tile;
    # all other entries are exact zeros so the wrapper can sum everything.
    row = jax.lax.broadcasted_iota(jnp.int32, (8, 128), 0)
    col = jax.lax.broadcasted_iota(jnp.int32, (8, 128), 1)
    out_ref[0] = jnp.where((row == 0) & (col == 0), acc, jnp.float32(0.0))


@jax.jit
def edge_loss(x: jnp.ndarray, y: jnp.ndarray) -> jnp.ndarray:
    """x, y: (N, C, H, W) float32; C must be 3 (module repeats kernel 3x)."""
    n, c, h, w = x.shape
    assert c == 3, "EdgeLoss uses a 3-channel depthwise Gaussian kernel"
    nc = n * c
    xf = x.reshape(nc, h, w).astype(jnp.float32)
    yf = y.reshape(nc, h, w).astype(jnp.float32)

    # ---- static layout parameters ----
    g = min(nc, max(1, 128 // w)) if w < 128 else 1   # images packed along lanes
    groups = -(-nc // g)                              # number of (H, G*W) slabs
    grp = max(1, min(groups, max(1, 256 // h)))       # slabs per grid step
    per_step = grp * g
    num_steps = -(-nc // per_step)
    nc_pad = num_steps * per_step
    pad = nc_pad - nc
    if pad:
        z = jnp.zeros((pad, h, w), jnp.float32)
        xf = jnp.concatenate([xf, z], axis=0)
        yf = jnp.concatenate([yf, z], axis=0)

    gw = g * w
    # pack g images side-by-side along lanes: (nc_pad, h, w) -> (steps*grp, h, g*w)
    xp = xf.reshape(num_steps * grp, g, h, w).transpose(0, 2, 1, 3).reshape(
        num_steps * grp, h, gw)
    yp = yf.reshape(num_steps * grp, g, h, w).transpose(0, 2, 1, 3).reshape(
        num_steps * grp, h, gw)

    # ---- folded constant operators (exact, float32) ----
    a_h = _gauss_band_matrix(h)
    a_w = _gauss_band_matrix(w)
    d_h = jnp.diag(((jnp.arange(h) % 2) == 0).astype(jnp.float32))
    d_w = jnp.diag(((jnp.arange(w) % 2) == 0).astype(jnp.float32))
    m_h = 2.0 * (a_h @ d_h @ a_h)                          # (H, H)
    m_w = 2.0 * (a_w.T @ d_w @ a_w.T)                      # (W, W)
    m_w_big = jnp.kron(jnp.eye(g, dtype=jnp.float32), m_w)  # (G*W, G*W)

    partials = pl.pallas_call(
        _edge_loss_kernel,
        out_shape=jax.ShapeDtypeStruct((num_steps, 8, 128), jnp.float32),
        grid_spec=pltpu.PrefetchScalarGridSpec(
            num_scalar_prefetch=0,
            grid=(num_steps,),
            in_specs=[
                pl.BlockSpec((grp, h, gw), lambda i: (i, 0, 0)),
                pl.BlockSpec((grp, h, gw), lambda i: (i, 0, 0)),
                pl.BlockSpec((h, h), lambda i: (0, 0)),
                pl.BlockSpec((gw, gw), lambda i: (0, 0)),
            ],
            out_specs=pl.BlockSpec((1, 8, 128), lambda i: (i, 0, 0)),
        ),
        compiler_params=pltpu.CompilerParams(
            dimension_semantics=("parallel",)),
    )(xp, yp, m_h, m_w_big)

    total = jnp.sum(partials)
    if pad:
        # Zero-padded images contribute exactly sqrt(0 + eps^2) = eps per element.
        total = total - jnp.float32(pad * h * w) * jnp.float32(EPS)
    # torch.mean over the full (N, C, H, W) diff tensor
    return total / jnp.float32(nc * h * w)


def _reference_edge_loss(x, y):
    """Pure-JAX reference that mirrors the PyTorch module step by step."""
    k1 = jnp.array([0.05, 0.25, 0.4, 0.25, 0.05], dtype=jnp.float32)
    k2 = jnp.outer(k1, k1)

    def conv_gauss(imgs):  # (NC, H, W), replicate padding, depthwise 5x5
        p = jnp.pad(imgs, ((0, 0), (2, 2), (2, 2)), mode="edge")
        hh, ww = imgs.shape[1], imgs.shape[2]
        out = jnp.zeros_like(imgs)
        for a in range(5):
            for b in range(5):
                out = out + k2[a, b] * p[:, a:a + hh, b:b + ww]
        return out

    def laplacian(imgs):
        f = conv_gauss(imgs)
        nf = jnp.zeros_like(f).at[:, ::2, ::2].set(f[:, ::2, ::2] * 4.0)
        f2 = conv_gauss(nf)
        return imgs - f2

    n, c, h, w = x.shape
    xs = x.reshape(n * c, h, w).astype(jnp.float32)
    ys = y.reshape(n * c, h, w).astype(jnp.float32)
    d = laplacian(xs) - laplacian(ys)
    return jnp.mean(jnp.sqrt(d * d + jnp.float32(EPS * EPS)))


if __name__ == "__main__":
    key = jax.random.PRNGKey(0)
    kx, ky = jax.random.split(key)
    # N=2, C=3 (fixed by the module's 3-channel Gaussian kernel), 16x16 spatial
    x = jax.random.uniform(kx, (2, 3, 16, 16), dtype=jnp.float32)
    y = jax.random.uniform(ky, (2, 3, 16, 16), dtype=jnp.float32)

    loss = edge_loss(x, y)
    jax.block_until_ready(loss)

    ref = _reference_edge_loss(x, y)
    jax.block_until_ready(ref)
    assert abs(float(loss) - float(ref)) < 1e-5 + 1e-4 * abs(float(ref)), (
        float(loss), float(ref))
    print("KERNEL_OK")
</pallas_src>

<mosaic_0001>
module attributes {stable_mosaic.version = 11 : i64} {
  func.func @_edge_loss_kernel(%arg0: i32, %arg1: memref<1x16x96xf32, #tpu.memory_space<vmem>>, %arg2: memref<1x16x96xf32, #tpu.memory_space<vmem>>, %arg3: memref<16x16xf32, #tpu.memory_space<vmem>>, %arg4: memref<96x96xf32, #tpu.memory_space<vmem>>, %arg5: memref<1x8x128xf32, #tpu.memory_space<vmem>>) attributes {dimension_semantics = [#tpu.dimension_semantics<parallel>], iteration_bounds = array<i64: 1>, scalar_prefetch = 0 : i64, scratch_operands = 0 : i64, tpu.core_type = #tpu.core_type<tc>, window_params = [{transform_indices = @transform_0, window_bounds = array<i64: 1, 16, 96>}, {transform_indices = @transform_1, window_bounds = array<i64: 1, 16, 96>}, {pipeline_mode = #tpu.pipeline_mode<synchronous>, transform_indices = @transform_2, window_bounds = array<i64: 16, 16>}, {pipeline_mode = #tpu.pipeline_mode<synchronous>, transform_indices = @transform_3, window_bounds = array<i64: 96, 96>}, {transform_indices = @transform_4, window_bounds = array<i64: 1, 8, 128>}]} {
    %c0 = arith.constant 0 : index
    %c0_0 = arith.constant 0 : index
    %0 = vector.load %arg3[%c0, %c0_0] : memref<16x16xf32, #tpu.memory_space<vmem>>, vector<16x16xf32>
    %c0_1 = arith.constant 0 : index
    %c0_2 = arith.constant 0 : index
    %1 = vector.load %arg4[%c0_1, %c0_2] : memref<96x96xf32, #tpu.memory_space<vmem>>, vector<96x96xf32>
    %c0_3 = arith.constant 0 : index
    %c0_4 = arith.constant 0 : index
    %c0_5 = arith.constant 0 : index
    %2 = vector.load %arg1[%c0_3, %c0_4, %c0_5] : memref<1x16x96xf32, #tpu.memory_space<vmem>>, vector<1x16x96xf32>
    %3 = vector.shape_cast %2 : vector<1x16x96xf32> to vector<16x96xf32>
    %c0_6 = arith.constant 0 : index
    %c0_7 = arith.constant 0 : index
    %c0_8 = arith.constant 0 : index
    %4 = vector.load %arg2[%c0_6, %c0_7, %c0_8] : memref<1x16x96xf32, #tpu.memory_space<vmem>>, vector<1x16x96xf32>
    %5 = vector.shape_cast %4 : vector<1x16x96xf32> to vector<16x96xf32>
    %6 = arith.subf %3, %5 : vector<16x96xf32>
    %cst = arith.constant dense<0.000000e+00> : vector<16x96xf32>
    %7 = tpu.matmul %6, %1, %cst {dimension_numbers = #tpu.dot_dimension_numbers<[1], [0], [0], [1], [0, 0, 1, 1], [], []>} : vector<16x96xf32>, vector<96x96xf32>, vector<16x96xf32> -> vector<16x96xf32>
    %cst_9 = arith.constant dense<0.000000e+00> : vector<16x96xf32>
    %8 = tpu.matmul %0, %7, %cst_9 {dimension_numbers = #tpu.dot_dimension_numbers<[1], [0], [0], [1], [0, 0, 1, 1], [], []>} : vector<16x16xf32>, vector<16x96xf32>, vector<16x96xf32> -> vector<16x96xf32>
    %9 = arith.subf %6, %8 : vector<16x96xf32>
    %10 = arith.mulf %9, %9 : vector<16x96xf32>
    %cst_10 = arith.constant 9.99999997E-7 : f32
    %11 = vector.broadcast %cst_10 : f32 to vector<16x96xf32>
    %12 = arith.addf %10, %11 : vector<16x96xf32>
    %13 = math.sqrt %12 : vector<16x96xf32>
    %14 = vector.shape_cast %13 : vector<16x96xf32> to vector<1x16x96xf32>
    %cst_11 = arith.constant dense<0.000000e+00> : vector<1xf32>
    %15 = vector.multi_reduction <add>, %14, %cst_11 [1, 2] : vector<1x16x96xf32> to vector<1xf32>
    %16 = vector.shape_cast %15 : vector<1xf32> to vector<1x1x1xf32>
    %17 = vector.extract %16[0, 0, 0] : f32 from vector<1x1x1xf32>
    %cst_12 = arith.constant 0.000000e+00 : f32
    %18 = arith.addf %cst_12, %17 : f32
    %19 = tpu.iota {dimensions = array<i32: 0>} : vector<8x128xi32>
    %20 = tpu.iota {dimensions = array<i32: 1>} : vector<8x128xi32>
    %c0_i32 = arith.constant 0 : i32
    %21 = vector.broadcast %c0_i32 : i32 to vector<8x128xi32>
    %22 = arith.cmpi eq, %19, %21 : vector<8x128xi32>
    %c0_i32_13 = arith.constant 0 : i32
    %23 = vector.broadcast %c0_i32_13 : i32 to vector<8x128xi32>
    %24 = arith.cmpi eq, %20, %23 : vector<8x128xi32>
    %25 = arith.andi %22, %24 : vector<8x128xi1>
    %cst_14 = arith.constant 0.000000e+00 : f32
    %26 = vector.broadcast %18 : f32 to vector<8x128xf32>
    %27 = vector.broadcast %cst_14 : f32 to vector<8x128xf32>
    %28 = arith.select %25, %26, %27 : vector<8x128xi1>, vector<8x128xf32>
    %c0_15 = arith.constant 0 : index
    %c0_16 = arith.constant 0 : index
    %c0_17 = arith.constant 0 : index
    %29 = vector.load %arg5[%c0_15, %c0_16, %c0_17] : memref<1x8x128xf32, #tpu.memory_space<vmem>>, vector<1x8x128xf32>
    %30 = vector.shape_cast %29 : vector<1x8x128xf32> to vector<8x128xf32>
    %31 = vector.shape_cast %28 : vector<8x128xf32> to vector<1x8x128xf32>
    tpu.vector_store %arg5[%c0_15, %c0_16, %c0_17], %31 {strides = array<i32>} : memref<1x8x128xf32, #tpu.memory_space<vmem>>, vector<1x8x128xf32>,
    return
  }
  func.func @transform_0(%arg0: i32) -> (i32, i32, i32) {
    %c0_i32 = arith.constant 0 : i32
    %c0_i32_0 = arith.constant 0 : i32
    %c0_i32_1 = arith.constant 0 : i32
    return %arg0, %c0_i32, %c0_i32_0 : i32, i32, i32
  }
  func.func @transform_1(%arg0: i32) -> (i32, i32, i32) {
    %c0_i32 = arith.constant 0 : i32
    %c0_i32_0 = arith.constant 0 : i32
    %c0_i32_1 = arith.constant 0 : i32
    return %arg0, %c0_i32, %c0_i32_0 : i32, i32, i32
  }
  func.func @transform_2(%arg0: i32) -> (i32, i32) {
    %c0_i32 = arith.constant 0 : i32
    %c0_i32_0 = arith.constant 0 : i32
    %c0_i32_1 = arith.constant 0 : i32
    return %c0_i32, %c0_i32_0 : i32, i32
  }
  func.func @transform_3(%arg0: i32) -> (i32, i32) {
    %c0_i32 = arith.constant 0 : i32
    %c0_i32_0 = arith.constant 0 : i32
    %c0_i32_1 = arith.constant 0 : i32
    return %c0_i32, %c0_i32_0 : i32, i32
  }
  func.func @transform_4(%arg0: i32) -> (i32, i32, i32) {
    %c0_i32 = arith.constant 0 : i32
    %c0_i32_0 = arith.constant 0 : i32
    %c0_i32_1 = arith.constant 0 : i32
    return %arg0, %c0_i32, %c0_i32_0 : i32, i32, i32
  }
}

</mosaic_0001>

<bundles_post_ra>
// kernel: edge_loss.1
= control target key start
LH: loop header
LB: loop body
LE: loop exit
PB: predicated region body
PF: predicated region fallthrough
CT: control target
= control target key end

     0   :  { %vm37_vm0 = vcmask 785408   ;;  %vm119_vm1 = vcmask 130048   ;;  %v234_v57 = vlaneseq  ;;  %s424_s3 = inlined_call_operand.vmem [shape: f32[96,96], index: 3, kind: input, shape index: {}]   ;;  %s425_s0 = inlined_call_operand.vmem [shape: f32[1,16,96], index: 0, kind: input, shape index: {}]   ;;  %s426_s1 = inlined_call_operand.vmem [shape: f32[1,16,96], index: 1, kind: input, shape index: {}]   ;;  %s427_s2 = inlined_call_operand.vmem [shape: f32[16,16], index: 2, kind: input, shape index: {}]   ;;  %s428_s4 = inlined_call_operand.vmem [shape: f32[1,8,128], index: 4, kind: output, shape index: {}]  }
   0x1   :  { %v19_v0 = vld [vmem:[%s424_s3] sm:$0xff]  ;;  %v20_v1 = vld [vmem:[%s424_s3 + $0x8] sm:$0xff]  ;;  %v21_v2 = vld [vmem:[%s424_s3 + $0x10] sm:$0xff] }
   0x2   :  { %v304_v3 = vpack.c.bf16 %v20_v1, %v19_v0  ;;  %v22_v4 = vld [vmem:[%s424_s3 + $0x18] sm:$0xff]  ;;  %v23_v6 = vld [vmem:[%s424_s3 + $0x20] sm:$0xff]  ;;  %v24_v7 = vld [vmem:[%s424_s3 + $0x28] sm:$0xff]  ;;  %v235_v58 = vshrl.u32 %v234_v57, 7  ;;  %v237_v59 = vand.u32 127, %v234_v57 }
   0x3   :  { %v308_v5 = vpack.c.bf16 %v22_v4, %v21_v2  ;;  %v31_v8 = vld [vmem:[%s425_s0] sm:$0xff]  ;;  %v312_v10 = vpack.c.bf16 %v24_v7, %v23_v6  ;;  %v25_v12 = vld [vmem:[%s424_s3 + $0x30] sm:$0xff]  ;;  %v26_v13 = vld [vmem:[%s424_s3 + $0x38] sm:$0xff] }
   0x4   :  { %305 = vmatprep.subr.bf16.mxu0 %v304_v3  ;;  %v33_v9 = vld [vmem:[%s426_s1] sm:$0xff]  ;;  %v316_v14 = vpack.c.bf16 %v26_v13, %v25_v12  ;;  %v28_v16 = vld [vmem:[%s424_s3 + $0x48] sm:$0xff]  ;;  %v29_v18 = vld [vmem:[%s424_s3 + $0x50] sm:$0xff]  ;;  %vm238_vm6 = vcmp.eq.s32.totalorder %v235_v58, 0  ;;  %vm239_vm7 = vcmp.eq.s32.totalorder %v237_v59, 0 }
   0x5   :  { %307 = vmatpush3.bf16.msra.mxu0 %v304_v3  ;;  %v35_v11 = vsub.f32 %v31_v8, %v33_v9  ;;  %v27_v15 = vld [vmem:[%s424_s3 + $0x40] sm:$0xff]  ;;  %v30_v19 = vld [vmem:[%s424_s3 + $0x58] sm:$0xff]  ;;  %v32_v21 = vld [vmem:[%s425_s0 + $0x8] sm:$0xff] }
   0x6   :  { %309 = vmatprep.subr.bf16.mxu0 %v308_v5  ;;  %v320_v17 = vpack.c.bf16 %v28_v16, %v27_v15  ;;  %v324_v20 = vpack.c.bf16 %v30_v19, %v29_v18  ;;  %v34_v22 = vld [vmem:[%s426_s1 + $0x8] sm:$0xff]  ;;  %v17_v24 = vld [vmem:[%s427_s2] sm:$0xff]  ;;  %vm240_vm8 = vmand %vm238_vm6, %vm239_vm7 }
   0x7   :  { %294 = vmatprep.mubr.msk.f32.mxu0 %vm37_vm0, %v35_v11  ;;  %v36_v23 = vsub.f32 %v32_v21, %v34_v22  ;;  %301 = vmatprep.mubr.msk.f32.mxu1 %vm119_vm1, %v17_v24  ;;  %v18_v28 = vld [vmem:[%s427_s2 + $0x8] sm:$0xff] }
   0x9   :  { %311 = vmatpush3.bf16.msra.mxu0 %v308_v5 }
   0xa   :  { %313 = vmatprep.subr.bf16.mxu0 %v312_v10 }
   0xd   :  { %315 = vmatpush3.bf16.msra.mxu0 %v312_v10 }
   0xe   :  { %317 = vmatprep.subr.bf16.mxu0 %v316_v14 }
  0x11   :  { %319 = vmatpush3.bf16.msra.mxu0 %v316_v14 }
  0x12   :  { %321 = vmatprep.subr.bf16.mxu0 %v320_v17 }
  0x15   :  { %323 = vmatpush3.bf16.msra.mxu0 %v320_v17 }
  0x16   :  { %325 = vmatprep.subr.bf16.mxu0 %v324_v20 }
  0x19   :  { %327 = vmatpush3.bf16.msra.mxu0 %v324_v20 }
  0x1c   :  { %295 = vmatmul.mubr.msk.f32.vlgmr.msra.gmra.mrb[0].mxu0 %vm37_vm0, %v36_v23 }
  0xef   :  { %v296_v25 = vpop.f32.mrb[0].mxu0 }
  0xf0   :  { %v110_v26 = vpop.f32.mrb[1].mxu0 }
  0xf1   :  { %v328_v27 = vpack.c.bf16 %v296_v25, %v110_v26 }
  0xf3   :  { %329 = vmatprep.subr.bf16.mxu1 %v328_v27 }
  0xf4   :  { %331 = vmatpush3.bf16.msra.mxu1 %v328_v27 }
  0xf7   :  { %302 = vmatmul.mubr.msk.f32.vlgmr.msra.gmra.mrb[0].mxu1 %vm119_vm1, %v18_v28 }
 0x1ca   :  { %v303_v29 = vpop.f32.mrb[0].mxu1 }
 0x1cb   :  { %v202_v30 = vsub.f32 %v36_v23, %v303_v29  ;;  %v192_v31 = vpop.f32.mrb[1].mxu1 }
 0x1cc   :  { %v201_v32 = vsub.f32 %v35_v11, %v192_v31 }
 0x1cd   :  { %v204_v33 = vmul.f32 %v202_v30, %v202_v30 }
 0x1ce   :  { %v203_v34 = vmul.f32 %v201_v32, %v201_v32 }
 0x1cf   :  { %v206_v35 = vadd.f32 1e-06, %v204_v33 }
 0x1d0   :  { %v205_v36 = vadd.f32 1e-06, %v203_v34 }
 0x1d1   :  { %334 = vrsqrt.f32 %v206_v35  ;;  %vm216_vm2 = vcmp.eq.f32.partialorder %v206_v35, inf  ;;  %v219_v41 = vand.u32 2147483648, %v206_v35  ;;  %vm218_vm4 = vcmp.eq.f32.partialorder %v206_v35, 0.0 }
 0x1d2   :  { %336 = vrsqrt.f32 %v205_v36  ;;  %vm209_vm3 = vcmp.eq.f32.partialorder %v205_v36, inf  ;;  %v212_v42 = vand.u32 2147483648, %v205_v36  ;;  %vm211_vm5 = vcmp.eq.f32.partialorder %v205_v36, 0.0 }
 0x1db   :  { %v335_v37 = vpop.eup %334 }
 0x1dc   :  { %v337_v38 = vpop.eup %336  ;;  %v215_v39 = vmul.f32 %v335_v37, %v206_v35 }
 0x1dd   :  { %v208_v40 = vmul.f32 %v337_v38, %v205_v36 }
 0x1de   :  { %v217_v43 = vsel %vm216_vm2, %v206_v35, %v215_v39 }
 0x1df   :  { %v210_v44 = vsel %vm209_vm3, %v205_v36, %v208_v40  ;;  %v220_v45 = vsel %vm218_vm4, %v219_v41, %v217_v43 }
 0x1e0   :  { %v213_v46 = vsel %vm211_vm5, %v212_v42, %v210_v44  ;;  %v222_v47 = vsel %vm37_vm0, %v220_v45, 0.0 }
 0x1e1   :  { %v221_v48 = vsel %vm37_vm0, %v213_v46, 0.0 }
 0x1e2   :  { %v223_v49 = vadd.f32 %v222_v47, %v221_v48 }
 0x1e4   :  { %224 = vadd.xlane.f32.xlu0 %v223_v49 }
 0x271   :  { %v225_v50 = vpop.xlane.xlu0 %224 }
 0x272   :  { %v226_v51 = vrot.slane %v225_v50, 4 }
 0x274   :  { %v227_v52 = vadd.f32 %v226_v51, %v225_v50 }
 0x276   :  { %v228_v53 = vrot.slane %v227_v52, 2 }
 0x278   :  { %v229_v54 = vadd.f32 %v228_v53, %v227_v52 }
 0x27a   :  { %v230_v55 = vrot.slane %v229_v54, 1 }
 0x27c   :  { %v231_v56 = vadd.f32 %v230_v55, %v229_v54 }
 0x27e   :  { %332 = vpush %v231_v56 }
 0x2af   :  { %s333_s1 = spop %332 }
 0x2b0   :  { %v241_v60 = vstv %s333_s1 }
 0x2b1   :  { %v242_v61 = vsel %vm240_vm8, %v241_v60, 0.0 }
 0x2b2   :  { %243 = vst [vmem:[%s428_s4] sm:$0xff] %v242_v61 }

</bundles_post_ra>
